<compile_context>
chip_gen: v6e
topology: v6e:2x2x1
jax: 0.10.0
libtpu: 0.0.40
codegen_flags: <defaults>
</compile_context>

<pallas_src>
import functools

import jax
import jax.numpy as jnp
from jax.experimental import pallas as pl
from jax.experimental.pallas import tpu as pltpu


def _round_up(x, m):
    return ((x + m - 1) // m) * m


def _cdiv(a, b):
    return (a + b - 1) // b


# ---------------------------------------------------------------------------
# Generation awareness: tile preferences + VMEM budget.
# ---------------------------------------------------------------------------
@functools.lru_cache(maxsize=1)
def _device_info():
    try:
        kind = jax.devices()[0].device_kind.lower()
    except Exception:  # pragma: no cover
        kind = ""
    is_v7 = "v7" in kind
    return {
        # Standard (prefill-class) tiles. 512/512/1024 works on every
        # generation: footprint ~7 MiB bf16, far under even v7x's VMEM.
        "tm": 512, "tn": 512, "tk": 1024,
        # Decode-class tiles: single M tile => pure weight streaming, so make
        # the weight tiles huge to amortize per-grid-step overhead.
        "tn_decode": 1024, "tk_decode": 2048,
        # Whole-pipeline VMEM budget. v7x: 64 MiB physical per TC -> leave
        # headroom for compiler scratch; v5e/v6e: 128 MiB physical.
        "vmem_budget": (48 << 20) if is_v7 else (96 << 20),
        "is_v7": is_v7,
    }


def _largest_divisor_tile(dim_padded, pref, step=128):
    """Largest multiple of `step` that divides `dim_padded` and is <= pref."""
    t = min(pref, dim_padded)
    t = max(step, (t // step) * step)
    while dim_padded % t != 0:
        t -= step
    return t


def _pad_target(dim, pref, step=128, slack=0.25):
    """Padded size for `dim`: use the largest tile t <= pref (multiple of
    `step`) whose pad-up overhead is <= `slack`; fall back to round_up(dim,
    step). Pad-up beats tile-shrink: lane-dense full-size tiles, and the
    extra pad (< one tile) is paid once at weight-prep time."""
    d = _round_up(dim, step)
    limit = int(d * (1.0 + slack))
    t = min(pref, d)
    t = max(step, (t // step) * step)
    while t > step:
        padded = _round_up(d, t)
        if padded <= limit:
            return padded
        t -= step
    return d


# ---------------------------------------------------------------------------
# Kernels: one (tm, tn) output tile, grid axis 2 iterates over K chunks.
# ---------------------------------------------------------------------------
def _linear_bias_kernel(x_ref, wt_ref, b_ref, o_ref, acc_ref):
    k = pl.program_id(2)

    @pl.when(k == 0)
    def _():
        # Fold the bias into the accumulator init -> no epilogue add.
        acc_ref[...] = jnp.broadcast_to(
            b_ref[...].astype(jnp.float32), acc_ref.shape
        )

    acc_ref[...] += jnp.dot(
        x_ref[...], wt_ref[...], preferred_element_type=jnp.float32
    )

    @pl.when(k == pl.num_programs(2) - 1)
    def _():
        o_ref[...] = acc_ref[...].astype(o_ref.dtype)


def _linear_nobias_kernel(x_ref, wt_ref, o_ref, acc_ref):
    k = pl.program_id(2)

    @pl.when(k == 0)
    def _():
        acc_ref[...] = jnp.zeros_like(acc_ref)

    acc_ref[...] += jnp.dot(
        x_ref[...], wt_ref[...], preferred_element_type=jnp.float32
    )

    @pl.when(k == pl.num_programs(2) - 1)
    def _():
        o_ref[...] = acc_ref[...].astype(o_ref.dtype)


# ---------------------------------------------------------------------------
# One-time weight preparation (do this at weight-load time and cache it).
# ---------------------------------------------------------------------------
def prepare_weight(weight, bias=None, *, compute_dtype=jnp.bfloat16):
    """weight: (output_size, input_size) as in the nn.Module.

    One-time prep: transpose to (K, N); cast to `compute_dtype` (bf16 by
    default -- halves weight HBM traffic and hits the bf16 MXU peak on
    v5e/v6e/v7x; accumulation stays f32 in-kernel; pass compute_dtype=None to
    keep the original dtype); zero-pad K/N up to generation-preferred tile
    multiples.

    Returns (wt_padded, bias_padded, output_size):
      wt_padded   : (K_pad, N_pad) in compute_dtype (or original dtype)
      bias_padded : (1, N_pad) float32, or None
    """
    # TODO(synk): block-major weight layout (N_pad//tn, K_pad, tn) would make
    # each weight-tile DMA a single contiguous region; skipped to keep the
    # decode-path tile blow-up decoupled from the stored layout.
    out_size, in_size = weight.shape
    info = _device_info()
    k_pad = _pad_target(in_size, info["tk"])
    n_pad = _pad_target(out_size, info["tn"])

    wt = jnp.transpose(weight)
    if compute_dtype is not None and wt.dtype != jnp.dtype(compute_dtype):
        wt = wt.astype(compute_dtype)
    if (k_pad, n_pad) != (in_size, out_size):
        wt = jnp.pad(wt, ((0, k_pad - in_size), (0, n_pad - out_size)))

    if bias is None:
        b = None
    else:
        b = jnp.pad(bias.astype(jnp.float32), (0, n_pad - out_size))
        b = b.reshape(1, n_pad)
    return wt, b, out_size


# ---------------------------------------------------------------------------
# Forward pass.
# ---------------------------------------------------------------------------
def column_parallel_linear(x, wt_padded, bias_padded, output_size, *,
                           tm=None, tn=None, tk=None, use_pallas=None,
                           weight_buffers=None):
    """y = F.linear(x, W, b) with (W, b) preprocessed by prepare_weight()."""
    *lead, in_size = x.shape
    k_pad, n_pad = wt_padded.shape
    assert in_size <= k_pad and output_size <= n_pad

    out_dtype = x.dtype
    m = 1
    for d in lead:
        m *= d

    # Small-problem fast path: pallas_call launch + per-grid-step overhead
    # dwarfs a few-microsecond matmul; XLA's fused path wins outright.
    if use_pallas is None:
        use_pallas = (m * in_size * output_size) >= (1 << 20)
    if not use_pallas:
        y = jnp.dot(
            x.reshape(m, in_size),
            wt_padded[:in_size, :output_size],
            preferred_element_type=jnp.float32,
        )
        if bias_padded is not None:
            y = y + bias_padded[:, :output_size]
        return y.astype(out_dtype).reshape(*lead, output_size)

    info = _device_info()

    # --- M tile: hug m (ceil-split across the fewest tiles, rounded to 8) so
    # padding waste and the final output-slice cost stay minimal.
    if tm is None:
        tm_ = _round_up(_cdiv(m, _cdiv(m, info["tm"])), 8)
    else:
        tm_ = tm
    m_pad = _round_up(m, tm_)
    grid_m = m_pad // tm_

    # --- N / K tiles: standard vs decode (single M tile) preferences.
    decode = grid_m == 1
    tn_pref = info["tn_decode"] if decode else info["tn"]
    tk_pref = info["tk_decode"] if decode else info["tk"]
    tn_ = tn if tn is not None else _largest_divisor_tile(n_pad, tn_pref)
    tk_ = tk if tk is not None else _largest_divisor_tile(k_pad, tk_pref)

    # --- Keep both v7x TensorCores busy when the parallel grid collapses to
    # one tile. Gated to v7x: on single-TC v5e/v6e splitting tn only adds
    # j-steps and x-tile re-fetches with zero parallel benefit.
    if (tn is None and info["is_v7"] and grid_m * (n_pad // tn_) < 2
            and n_pad >= 256):
        tn_ = _largest_divisor_tile(n_pad, max(128, n_pad // 2))

    # --- VMEM footprint with per-operand itemsizes (mixed dtypes supported).
    compute_dtype = wt_padded.dtype
    x_cast = jnp.dtype(compute_dtype).itemsize < jnp.dtype(x.dtype).itemsize
    x_bytes = jnp.dtype(compute_dtype if x_cast else x.dtype).itemsize
    w_bytes = jnp.dtype(wt_padded.dtype).itemsize
    o_bytes = jnp.dtype(out_dtype).itemsize
    n_wbuf = 2 if weight_buffers is None else int(weight_buffers)

    def _footprint(tm_v, tn_v, tk_v):
        f = (2 * tm_v * tk_v * x_bytes          # double-buffered x tiles
             + n_wbuf * tk_v * tn_v * w_bytes   # weight tiles
             + 2 * tm_v * tn_v * o_bytes        # double-buffered output tiles
             + tm_v * tn_v * 4)                 # f32 accumulator scratch
        if bias_padded is not None:
            f += 2 * tn_v * 4
        return f

    budget = info["vmem_budget"]
    headroom = 1.5
    while _footprint(tm_, tn_, tk_) * headroom > budget and tk_ > 128:
        tk_ = _largest_divisor_tile(k_pad, tk_ - 128)
    while _footprint(tm_, tn_, tk_) * headroom > budget and tn_ > 128:
        tn_ = _largest_divisor_tile(n_pad, tn_ - 128)

    assert m_pad % tm_ == 0 and n_pad % tn_ == 0 and k_pad % tk_ == 0

    vmem_limit = int(min(max(headroom * _footprint(tm_, tn_, tk_), 32 << 20),
                         budget))

    # --- Prepare the activation: cast down to the weight's compute dtype
    # (bf16 MXU path, halves x traffic), then zero-pad M/K.
    x2d = x.reshape(m, in_size)
    if x_cast:
        x2d = x2d.astype(compute_dtype)
    if m_pad != m or k_pad != in_size:
        x2d = jnp.pad(x2d, ((0, m_pad - m), (0, k_pad - in_size)))

    grid = (grid_m, n_pad // tn_, k_pad // tk_)
    cparams = pltpu.CompilerParams(
        dimension_semantics=("parallel", "parallel", "arbitrary"),
        vmem_limit_bytes=vmem_limit,
    )

    # Optional deeper weight buffering (sweep 2 vs 3 on decode shapes).
    if weight_buffers is not None and int(weight_buffers) != 2:
        w_spec = pl.BlockSpec((tk_, tn_), lambda i, j, k: (k, j),
                              pipeline_mode=pl.Buffered(int(weight_buffers)))
    else:
        w_spec = pl.BlockSpec((tk_, tn_), lambda i, j, k: (k, j))

    if bias_padded is not None:
        out2d = pl.pallas_call(
            _linear_bias_kernel,
            out_shape=jax.ShapeDtypeStruct((m_pad, n_pad), out_dtype),
            grid_spec=pltpu.PrefetchScalarGridSpec(
                num_scalar_prefetch=0,
                grid=grid,
                in_specs=[
                    pl.BlockSpec((tm_, tk_), lambda i, j, k: (i, k)),
                    w_spec,
                    pl.BlockSpec((1, tn_), lambda i, j, k: (0, j)),
                ],
                out_specs=pl.BlockSpec((tm_, tn_), lambda i, j, k: (i, j)),
                scratch_shapes=[pltpu.VMEM((tm_, tn_), jnp.float32)],
            ),
            compiler_params=cparams,
        )(x2d, wt_padded, bias_padded)
    else:
        out2d = pl.pallas_call(
            _linear_nobias_kernel,
            out_shape=jax.ShapeDtypeStruct((m_pad, n_pad), out_dtype),
            grid_spec=pltpu.PrefetchScalarGridSpec(
                num_scalar_prefetch=0,
                grid=grid,
                in_specs=[
                    pl.BlockSpec((tm_, tk_), lambda i, j, k: (i, k)),
                    w_spec,
                ],
                out_specs=pl.BlockSpec((tm_, tn_), lambda i, j, k: (i, j)),
                scratch_shapes=[pltpu.VMEM((tm_, tn_), jnp.float32)],
            ),
            compiler_params=cparams,
        )(x2d, wt_padded)

    out2d = out2d[:m, :output_size]
    return out2d.reshape(*lead, output_size)


# TODO(synk): tensor-parallel sharding (weight_loader narrow / tp_rank) is a
# no-op at tp_size=1 and is not modeled here.

if __name__ == "__main__":
    key = jax.random.PRNGKey(0)

    # ---- Test 1: module config input_size=32, output_size=64, bias=True,
    # bf16 compute (default), forced Pallas path (decode-style single M tile).
    input_size, output_size = 32, 64
    batch, seq = 2, 8
    kx, kw, kb = jax.random.split(key, 3)
    x = jax.random.normal(kx, (batch, seq, input_size), dtype=jnp.float32)
    weight = jax.random.normal(kw, (output_size, input_size),
                               dtype=jnp.float32) * 0.02
    bias = jax.random.normal(kb, (output_size,), dtype=jnp.float32) * 0.02

    wt_p, b_p, out_sz = prepare_weight(weight, bias)      # bf16 weights
    fwd = jax.jit(functools.partial(
        column_parallel_linear, output_size=out_sz, use_pallas=True))
    y = fwd(x, wt_p, b_p)
    jax.block_until_ready(y)
    y_ref = jnp.einsum("bsi,oi->bso", x, weight) + bias
    assert y.shape == (batch, seq, output_size)
    assert y.dtype == x.dtype
    assert jnp.allclose(y, y_ref, atol=2e-2, rtol=2e-2), "mismatch (bf16 path)"

    # ---- Test 2: non-divisible dims exercise the pad-up path; f32 weights.
    in2, out2, b2, s2 = 200, 320, 3, 40
    k2 = jax.random.split(key, 6)
    x2 = jax.random.normal(k2[3], (b2, s2, in2), dtype=jnp.float32)
    w2 = jax.random.normal(k2[4], (out2, in2), dtype=jnp.float32) * 0.02
    bb2 = jax.random.normal(k2[5], (out2,), dtype=jnp.float32) * 0.02
    wt2, bp2, osz2 = prepare_weight(w2, bb2, compute_dtype=None)  # keep f32
    fwd2 = jax.jit(functools.partial(
        column_parallel_linear, output_size=osz2, use_pallas=True))
    y2 = fwd2(x2, wt2, bp2)
    jax.block_until_ready(y2)
    y2_ref = jnp.einsum("bsi,oi->bso", x2, w2) + bb2
    assert y2.shape == (b2, s2, out2)
    assert jnp.allclose(y2, y2_ref, atol=1e-4, rtol=1e-4), \
        "mismatch (f32 padded path)"

    # ---- Test 3: bias=False (module default), bf16 weights, decode shape.
    in3, out3, m3 = 256, 512, 4
    k3 = jax.random.split(key, 8)
    x3 = jax.random.normal(k3[6], (m3, in3), dtype=jnp.float32)
    w3 = jax.random.normal(k3[7], (out3, in3), dtype=jnp.float32) * 0.02
    wt3, _, osz3 = prepare_weight(w3, None)
    fwd3 = jax.jit(functools.partial(
        column_parallel_linear, bias_padded=None, output_size=osz3,
        use_pallas=True))
    y3 = fwd3(x3, wt3)
    jax.block_until_ready(y3)
    y3_ref = x3 @ w3.T
    assert y3.shape == (m3, out3)
    assert jnp.allclose(y3, y3_ref, atol=2e-2, rtol=2e-2), \
        "mismatch (no-bias path)"

    print("KERNEL_OK")
</pallas_src>

<mosaic_0001>
module attributes {stable_mosaic.version = 11 : i64} {
  func.func @_linear_bias_kernel(%arg0: i32, %arg1: i32, %arg2: i32, %arg3: memref<16x128xbf16, #tpu.memory_space<vmem>>, %arg4: memref<128x128xbf16, #tpu.memory_space<vmem>>, %arg5: memref<1x128xf32, #tpu.memory_space<vmem>>, %arg6: memref<16x128xf32, #tpu.memory_space<vmem>>, %arg7: memref<16x128xf32, #tpu.memory_space<vmem>>) attributes {dimension_semantics = [#tpu.dimension_semantics<parallel>, #tpu.dimension_semantics<parallel>, #tpu.dimension_semantics<arbitrary>], iteration_bounds = array<i64: 1, 1, 1>, scalar_prefetch = 0 : i64, scratch_operands = 1 : i64, tpu.core_type = #tpu.core_type<tc>, window_params = [{transform_indices = @transform_0, window_bounds = array<i64: 16, 128>}, {transform_indices = @transform_1, window_bounds = array<i64: 128, 128>}, {transform_indices = @transform_2, window_bounds = array<i64: 1, 128>}, {transform_indices = @transform_3, window_bounds = array<i64: 16, 128>}]} {
    %c0_i32 = arith.constant 0 : i32
    %0 = arith.cmpi eq, %arg2, %c0_i32 : i32
    %1 = arith.extui %0 : i1 to i32
    %c0_i32_0 = arith.constant 0 : i32
    %2 = arith.cmpi ne, %1, %c0_i32_0 : i32
    scf.if %2 {
      %c0_10 = arith.constant 0 : index
      %c0_11 = arith.constant 0 : index
      %12 = vector.load %arg5[%c0_10, %c0_11] : memref<1x128xf32, #tpu.memory_space<vmem>>, vector<1x128xf32>
      %13 = vector.shape_cast %12 : vector<1x128xf32> to vector<1x128xf32>
      %14 = vector.broadcast %13 : vector<1x128xf32> to vector<16x128xf32>
      %c0_12 = arith.constant 0 : index
      %c0_13 = arith.constant 0 : index
      %15 = vector.load %arg7[%c0_12, %c0_13] : memref<16x128xf32, #tpu.memory_space<vmem>>, vector<16x128xf32>
      tpu.vector_store %arg7[%c0_12, %c0_13], %14 {strides = array<i32>} : memref<16x128xf32, #tpu.memory_space<vmem>>, vector<16x128xf32>,
    } else {
    }
    %c0 = arith.constant 0 : index
    %c0_1 = arith.constant 0 : index
    %3 = vector.load %arg7[%c0, %c0_1] : memref<16x128xf32, #tpu.memory_space<vmem>>, vector<16x128xf32>
    %c0_2 = arith.constant 0 : index
    %c0_3 = arith.constant 0 : index
    %4 = vector.load %arg3[%c0_2, %c0_3] : memref<16x128xbf16, #tpu.memory_space<vmem>>, vector<16x128xbf16>
    %c0_4 = arith.constant 0 : index
    %c0_5 = arith.constant 0 : index
    %5 = vector.load %arg4[%c0_4, %c0_5] : memref<128x128xbf16, #tpu.memory_space<vmem>>, vector<128x128xbf16>
    %cst = arith.constant dense<0.000000e+00> : vector<16x128xf32>
    %6 = tpu.matmul %4, %5, %cst {dimension_numbers = #tpu.dot_dimension_numbers<[1], [0], [0], [1], [0, 0, 1, 1], [], []>} : vector<16x128xbf16>, vector<128x128xbf16>, vector<16x128xf32> -> vector<16x128xf32>
    %7 = arith.addf %3, %6 : vector<16x128xf32>
    %c0_6 = arith.constant 0 : index
    %c0_7 = arith.constant 0 : index
    %8 = vector.load %arg7[%c0_6, %c0_7] : memref<16x128xf32, #tpu.memory_space<vmem>>, vector<16x128xf32>
    tpu.vector_store %arg7[%c0_6, %c0_7], %7 {strides = array<i32>} : memref<16x128xf32, #tpu.memory_space<vmem>>, vector<16x128xf32>,
    %c0_i32_8 = arith.constant 0 : i32
    %9 = arith.cmpi eq, %arg2, %c0_i32_8 : i32
    %10 = arith.extui %9 : i1 to i32
    %c0_i32_9 = arith.constant 0 : i32
    %11 = arith.cmpi ne, %10, %c0_i32_9 : i32
    scf.if %11 {
      %c0_10 = arith.constant 0 : index
      %c0_11 = arith.constant 0 : index
      %12 = vector.load %arg7[%c0_10, %c0_11] : memref<16x128xf32, #tpu.memory_space<vmem>>, vector<16x128xf32>
      %c0_12 = arith.constant 0 : index
      %c0_13 = arith.constant 0 : index
      %13 = vector.load %arg6[%c0_12, %c0_13] : memref<16x128xf32, #tpu.memory_space<vmem>>, vector<16x128xf32>
      tpu.vector_store %arg6[%c0_12, %c0_13], %12 {strides = array<i32>} : memref<16x128xf32, #tpu.memory_space<vmem>>, vector<16x128xf32>,
    } else {
    }
    return
  }
  func.func @transform_0(%arg0: i32, %arg1: i32, %arg2: i32) -> (i32, i32) {
    %c0_i32 = arith.constant 0 : i32
    return %arg0, %arg2 : i32, i32
  }
  func.func @transform_1(%arg0: i32, %arg1: i32, %arg2: i32) -> (i32, i32) {
    %c0_i32 = arith.constant 0 : i32
    return %arg2, %arg1 : i32, i32
  }
  func.func @transform_2(%arg0: i32, %arg1: i32, %arg2: i32) -> (i32, i32) {
    %c0_i32 = arith.constant 0 : i32
    %c0_i32_0 = arith.constant 0 : i32
    return %c0_i32, %arg1 : i32, i32
  }
  func.func @transform_3(%arg0: i32, %arg1: i32, %arg2: i32) -> (i32, i32) {
    %c0_i32 = arith.constant 0 : i32
    return %arg0, %arg1 : i32, i32
  }
}

</mosaic_0001>

<bundles_post_ra>
// kernel: column_parallel_linear.1
= control target key start
LH: loop header
LB: loop body
LE: loop exit
PB: predicated region body
PF: predicated region fallthrough
CT: control target
= control target key end

     0   :  { %8 = vsyncpa [#allocation4], 0  ;;  %s248_s12 = smov [#allocation3]   ;;  %s288_s0 = inlined_call_operand.vmem [shape: bf16[16,128], index: 0, kind: input, shape index: {}]   ;;  %s289_s1 = inlined_call_operand.hbm [shape: bf16[128,128], index: 1, kind: input, shape index: {}]   ;;  %s290_s2 = inlined_call_operand.vmem [shape: f32[1,128], index: 2, kind: input, shape index: {}]   ;;  %s291_s3 = inlined_call_operand.vmem [shape: f32[16,128], index: 3, kind: output, shape index: {}]  }
   0x1   :  { %s16_s13 = sshll.u32 %s248_s12, 4  ;;  %s17_s13 = int_to_ptr.vmem [resolvable:$true] %s16_s13 }
   0x2   :  { %s234_s14 = scalar_lea.vmem %s17_s13, 1024  ;;  %p239_p1 = scmp.lt.s32.totalorder %s17_s13, %s17_s13 }
   0x3   :  { %p235_p0 = scmp.ne.s32.totalorder %s17_s13, %s234_s14  ;;  %p240_p2 = scmp.lt.s32.totalorder %s234_s14, %s234_s14 }
   0x5   :  { %p241_p3 = por %p240_p2, %p239_p1 }
   0x7   :  { %p242_p4 = pnand %p241_p3, %p235_p0 }
   0x9   :  { %245 = shalt.err (!%p242_p4)
}
   0xa   :  { %s249_s15 = smov 64   ;;  %s250_s16 = smov 4  }
   0xb   :  { %22 = dma.hbm_to_vmem [thread:$0]  %s289_s1, 1024, %s17_s13, [#allocation4], %s249_s15, %s249_s15, %s250_s16  }
   0xc   :  { %246 = dma.done.wait [#allocation4], 1024  }
   0xd   :  { %247 = vsyncadd [#allocation4], 4294966272  ;;  %v251_v0 = vmov 0.0   ;;  %vm252_vm0 = vmmov 0   ;;  %v217_v1 = vld [vmem:[#allocation3 + $0x38] sm:$0xff]   ;;  %v218_v2 = vld [vmem:[#allocation3 + $0x30] sm:$0xff]  }
   0xe   :  { %192 = vmatprep.subr.bf16.mxu0 %v251_v0  ;;  %208 = vmatprep.mubr.msk.bf16.mxu0 %vm252_vm0, %v251_v0  ;;  %v219_v3 = vld [vmem:[#allocation3 + $0x28] sm:$0xff]   ;;  %v220_v4 = vld [vmem:[#allocation3 + $0x20] sm:$0xff]   ;;  %v221_v5 = vld [vmem:[#allocation3 + $0x18] sm:$0xff]  }
   0xf   :  { %193 = vmatpush3.bf16.msra.mxu0 %v217_v1  ;;  %v222_v6 = vld [vmem:[#allocation3 + $0x10] sm:$0xff]   ;;  %v223_v7 = vld [vmem:[#allocation3 + $0x8] sm:$0xff]   ;;  %v224_v8 = vld [vmem:[#allocation3] sm:$0xff]  }
  0x10   :  { %194 = vmatprep.subr.bf16.mxu0 %v251_v0  ;;  %v225_v9 = vld [vmem:[%s288_s0] sm:$0xff]  }
  0x11   :  { %v173_v10 = vld [vmem:[%s290_s2] ss:$0 sm:$0xff] }
  0x13   :  { %195 = vmatpush3.bf16.msra.mxu0 %v218_v2 }
  0x14   :  { %196 = vmatprep.subr.bf16.mxu0 %v251_v0 }
  0x17   :  { %197 = vmatpush3.bf16.msra.mxu0 %v219_v3 }
  0x18   :  { %198 = vmatprep.subr.bf16.mxu0 %v251_v0 }
  0x1b   :  { %199 = vmatpush3.bf16.msra.mxu0 %v220_v4 }
  0x1c   :  { %200 = vmatprep.subr.bf16.mxu0 %v251_v0 }
  0x1f   :  { %201 = vmatpush3.bf16.msra.mxu0 %v221_v5 }
  0x20   :  { %202 = vmatprep.subr.bf16.mxu0 %v251_v0 }
  0x23   :  { %203 = vmatpush3.bf16.msra.mxu0 %v222_v6 }
  0x24   :  { %204 = vmatprep.subr.bf16.mxu0 %v251_v0 }
  0x27   :  { %205 = vmatpush3.bf16.msra.mxu0 %v223_v7 }
  0x28   :  { %206 = vmatprep.subr.bf16.mxu0 %v251_v0 }
  0x2b   :  { %207 = vmatpush3.bf16.msra.mxu0 %v224_v8 }
  0x2e   :  { %209 = vmatmul.mubr.bf16.vlgmr.msra.gmra.mxu0 %v225_v9 }
  0xee   :  { %v150_v11 = vpop.f32.mrf.mxu0 }
  0xef   :  { %v157_v12 = vadd.f32 %v173_v10, %v150_v11 }
  0xf0   :  { %v210_v13 = vpop.f32.mrf.mxu0 }
  0xf1   :  { %166 = vst [vmem:[%s291_s3] sm:$0xff] %v157_v12 }
  0xf2   :  { %v153_v14 = vpop.f32.mrf.mxu0 }
  0xf3   :  { %v158_v15 = vadd.f32 %v173_v10, %v153_v14 }
  0xf4   :  { %v211_v16 = vpop.f32.mrf.mxu0 }
  0xf5   :  { %167 = vst [vmem:[%s291_s3 + $0x8] sm:$0xff] %v158_v15 }
  0xf6   :  { %172 = vsyncpa [#allocation4], 1 }

</bundles_post_ra>
